<compile_context>
chip_gen: v6e
topology: v6e:2x2x1
jax: 0.10.0
libtpu: 0.0.40
codegen_flags: <defaults>
</compile_context>

<pallas_src>
import jax
import jax.numpy as jnp
from jax.experimental import pallas as pl
from jax.experimental.pallas import tpu as pltpu


def _round_up(x, m):
    return ((x + m - 1) // m) * m


_NEG_BIG = -1e30  # effectively -inf for padded classifier lanes


def lstm_classifier_kernel(x_ref, wih_ref, whh_ref, b_ref, wc_ref, bc_ref,
                           out_ref, xw_sc, hs_sc):
    """Full LSTM recurrence + Linear + log_softmax, resident in VMEM."""
    T = x_ref.shape[0]
    H = whh_ref.shape[0]                 # hidden size (32); 4*H == 128 lanes

    # (2) Hoisted input projection + combined bias for all timesteps,
    #     parked in VMEM so each step's row fetch is a plain vld.
    xw_sc[...] = (jnp.dot(x_ref[...], wih_ref[...],
                          preferred_element_type=jnp.float32)
                  + b_ref[...])                                   # (T, 4H)

    whh = whh_ref[...]                   # (H, 4H) — single MXU column tile

    # (4) State carried in vregs; h0 = c0 = 0 (PyTorch default).
    h = jnp.zeros((1, H), jnp.float32)
    c = jnp.zeros((1, H), jnp.float32)

    # Static full unroll of the T-step recurrence (T=8).  If T scales, switch
    # to lax.fori_loop(..., unroll=4..8) to bound vreg live ranges.
    for t in range(T):
        gates = (jnp.dot(h, whh, preferred_element_type=jnp.float32)
                 + xw_sc[pl.ds(t, 1), :])                         # (1, 4H)
        # (1) Two full-slab EUP pushes; 32-lane gate extracts go to the XLU.
        sig = jax.nn.sigmoid(gates)
        th = jnp.tanh(gates)
        i_g = sig[:, 0 * H:1 * H]
        f_g = sig[:, 1 * H:2 * H]
        g_g = th[:, 2 * H:3 * H]
        o_g = sig[:, 3 * H:4 * H]
        c = f_g * c + i_g * g_g
        h = o_g * jnp.tanh(c)
        hs_sc[pl.ds(t, 1), :] = h        # (5) off the recurrence critical path

    # (3) Batched classifier + log_softmax epilogue over a lane-dense slab.
    hs = hs_sc[...]                                               # (T, H)
    tag = (jnp.dot(hs, wc_ref[...], preferred_element_type=jnp.float32)
           + bc_ref[...])                                         # (T, OP)
    m = jnp.max(tag, axis=-1, keepdims=True)
    lse = jnp.log(jnp.sum(jnp.exp(tag - m), axis=-1, keepdims=True)) + m
    out_ref[...] = tag - lse             # single unmasked (T, 128) store


def nn_mod_forward(sentence, packed_params, output_size):
    """sentence: (T, input_size) float32. Returns (T, output_size) log-probs."""
    wih_p, whh_p, bias_p, wc_p, bc_p = packed_params
    T = sentence.shape[0]
    H = whh_p.shape[0]
    G = whh_p.shape[1]                   # 4*H
    OP = wc_p.shape[1]                   # padded output lanes (multiple of 128)

    out = pl.pallas_call(
        lstm_classifier_kernel,
        out_shape=jax.ShapeDtypeStruct((T, OP), jnp.float32),
        scratch_shapes=[
            pltpu.VMEM((T, G), jnp.float32),   # hoisted x @ W_ih + bias
            pltpu.VMEM((T, H), jnp.float32),   # per-step hidden states
        ],
    )(sentence, wih_p, whh_p, bias_p, wc_p, bc_p)
    return out[:, :output_size]


def make_torch_params(key, input_size, hidden_size, output_size):
    """Deterministic synthetic parameters in torch.nn.LSTM / Linear layout."""
    ks = jax.random.split(key, 6)
    H = hidden_size
    scale = 1.0 / jnp.sqrt(H)
    w_ih = jax.random.uniform(ks[0], (4 * H, input_size), jnp.float32, -scale, scale)
    w_hh = jax.random.uniform(ks[1], (4 * H, H), jnp.float32, -scale, scale)
    b_ih = jax.random.uniform(ks[2], (4 * H,), jnp.float32, -scale, scale)
    b_hh = jax.random.uniform(ks[3], (4 * H,), jnp.float32, -scale, scale)
    w_c = jax.random.uniform(ks[4], (output_size, H), jnp.float32, -scale, scale)
    b_c = jax.random.uniform(ks[5], (output_size,), jnp.float32, -scale, scale)
    return (w_ih, w_hh, b_ih, b_hh, w_c, b_c)


def pack_params(torch_params, hidden_size):
    """Transpose to x @ W layout (compact gates) and lane-pad the classifier."""
    w_ih, w_hh, b_ih, b_hh, w_c, b_c = torch_params
    H = hidden_size
    O = w_c.shape[0]
    OP = _round_up(O, 128)

    wih_p = jnp.asarray(w_ih.T, jnp.float32)                     # (D, 4H)
    whh_p = jnp.asarray(w_hh.T, jnp.float32)                     # (H, 4H)
    bias_p = (b_ih + b_hh).reshape(1, 4 * H).astype(jnp.float32)  # (1, 4H)
    # Zero weight columns + -1e30 bias on padded class lanes -> exp()==0 in
    # the log_softmax, sliced off in the wrapper.
    wc_p = jnp.zeros((H, OP), jnp.float32).at[:, :O].set(w_c.T)   # (H, OP)
    bc_p = jnp.full((1, OP), _NEG_BIG, jnp.float32).at[:, :O].set(b_c)
    return (wih_p, whh_p, bias_p, wc_p, bc_p)


def reference_forward(sentence, torch_params):
    """Pure-JAX reference mirroring PyTorch LSTM + Linear + log_softmax."""
    w_ih, w_hh, b_ih, b_hh, w_c, b_c = torch_params
    H = w_hh.shape[1]
    h = jnp.zeros((1, H), jnp.float32)
    c = jnp.zeros((1, H), jnp.float32)
    outs = []
    for t in range(sentence.shape[0]):
        x_t = sentence[t:t + 1]
        gates = x_t @ w_ih.T + h @ w_hh.T + b_ih + b_hh
        i = jax.nn.sigmoid(gates[:, 0:H])
        f = jax.nn.sigmoid(gates[:, H:2 * H])
        g = jnp.tanh(gates[:, 2 * H:3 * H])
        o = jax.nn.sigmoid(gates[:, 3 * H:4 * H])
        c = f * c + i * g
        h = o * jnp.tanh(c)
        outs.append(h)
    hs = jnp.concatenate(outs, axis=0)
    tag = hs @ w_c.T + b_c
    return jax.nn.log_softmax(tag, axis=1)


if __name__ == "__main__":
    # Small shapes consistent with the module: seq=8, input=16, hidden=32, out=8.
    T, INPUT, HIDDEN, OUTPUT = 8, 16, 32, 8

    key = jax.random.PRNGKey(0)
    k_x, k_p = jax.random.split(key)
    sentence = jax.random.normal(k_x, (T, INPUT), jnp.float32)
    torch_params = make_torch_params(k_p, INPUT, HIDDEN, OUTPUT)
    packed = pack_params(torch_params, HIDDEN)

    out = nn_mod_forward(sentence, packed, OUTPUT)
    out = jax.block_until_ready(out)

    ref = reference_forward(sentence, torch_params)
    assert out.shape == (T, OUTPUT)
    assert jnp.allclose(out, ref, atol=1e-4, rtol=1e-4), "mismatch vs reference"

    print("KERNEL_OK")
</pallas_src>

<mosaic_0001>
module attributes {stable_mosaic.version = 11 : i64} {
  func.func @lstm_classifier_kernel(%arg0: memref<8x16xf32, #tpu.memory_space<vmem>>, %arg1: memref<16x128xf32, #tpu.memory_space<vmem>>, %arg2: memref<32x128xf32, #tpu.memory_space<vmem>>, %arg3: memref<1x128xf32, #tpu.memory_space<vmem>>, %arg4: memref<32x128xf32, #tpu.memory_space<vmem>>, %arg5: memref<1x128xf32, #tpu.memory_space<vmem>>, %arg6: memref<8x128xf32, #tpu.memory_space<vmem>>, %arg7: memref<8x128xf32, #tpu.memory_space<vmem>>, %arg8: memref<8x32xf32, #tpu.memory_space<vmem>>) attributes {dimension_semantics = [], scalar_prefetch = 0 : i64, scratch_operands = 2 : i64, tpu.core_type = #tpu.core_type<tc>} {
    %c0 = arith.constant 0 : index
    %c0_0 = arith.constant 0 : index
    %0 = vector.load %arg0[%c0, %c0_0] : memref<8x16xf32, #tpu.memory_space<vmem>>, vector<8x16xf32>
    %c0_1 = arith.constant 0 : index
    %c0_2 = arith.constant 0 : index
    %1 = vector.load %arg1[%c0_1, %c0_2] : memref<16x128xf32, #tpu.memory_space<vmem>>, vector<16x128xf32>
    %cst = arith.constant dense<0.000000e+00> : vector<8x128xf32>
    %2 = tpu.matmul %0, %1, %cst {dimension_numbers = #tpu.dot_dimension_numbers<[1], [0], [0], [1], [0, 0, 1, 1], [], []>} : vector<8x16xf32>, vector<16x128xf32>, vector<8x128xf32> -> vector<8x128xf32>
    %c0_3 = arith.constant 0 : index
    %c0_4 = arith.constant 0 : index
    %3 = vector.load %arg3[%c0_3, %c0_4] : memref<1x128xf32, #tpu.memory_space<vmem>>, vector<1x128xf32>
    %4 = vector.broadcast %3 : vector<1x128xf32> to vector<8x128xf32>
    %5 = arith.addf %2, %4 : vector<8x128xf32>
    %c0_5 = arith.constant 0 : index
    %c0_6 = arith.constant 0 : index
    %6 = vector.load %arg7[%c0_5, %c0_6] : memref<8x128xf32, #tpu.memory_space<vmem>>, vector<8x128xf32>
    tpu.vector_store %arg7[%c0_5, %c0_6], %5 {strides = array<i32>} : memref<8x128xf32, #tpu.memory_space<vmem>>, vector<8x128xf32>,
    %c0_7 = arith.constant 0 : index
    %c0_8 = arith.constant 0 : index
    %7 = vector.load %arg2[%c0_7, %c0_8] : memref<32x128xf32, #tpu.memory_space<vmem>>, vector<32x128xf32>
    %cst_9 = arith.constant 0.000000e+00 : f32
    %8 = vector.broadcast %cst_9 : f32 to vector<1x32xf32>
    %cst_10 = arith.constant 0.000000e+00 : f32
    %9 = vector.broadcast %cst_10 : f32 to vector<1x32xf32>
    %cst_11 = arith.constant dense<0.000000e+00> : vector<1x128xf32>
    %10 = tpu.matmul %8, %7, %cst_11 {dimension_numbers = #tpu.dot_dimension_numbers<[1], [0], [0], [1], [0, 0, 1, 1], [], []>} : vector<1x32xf32>, vector<32x128xf32>, vector<1x128xf32> -> vector<1x128xf32>
    %c0_12 = arith.constant 0 : index
    %c0_13 = arith.constant 0 : index
    %11 = vector.load %arg7[%c0_12, %c0_13] : memref<8x128xf32, #tpu.memory_space<vmem>>, vector<1x128xf32>
    %12 = arith.addf %10, %11 : vector<1x128xf32>
    %13 = arith.negf %12 : vector<1x128xf32>
    %14 = math.exp %13 : vector<1x128xf32>
    %cst_14 = arith.constant 1.000000e+00 : f32
    %15 = vector.broadcast %cst_14 : f32 to vector<1x128xf32>
    %16 = arith.addf %15, %14 : vector<1x128xf32>
    %17 = arith.divf %15, %16 : vector<1x128xf32>
    %18 = math.tanh %12 : vector<1x128xf32>
    %19 = vector.extract_strided_slice %17 {offsets = [0, 0], sizes = [1, 32], strides = [1, 1]} : vector<1x128xf32> to vector<1x32xf32>
    %20 = vector.extract_strided_slice %17 {offsets = [0, 32], sizes = [1, 32], strides = [1, 1]} : vector<1x128xf32> to vector<1x32xf32>
    %21 = vector.extract_strided_slice %18 {offsets = [0, 64], sizes = [1, 32], strides = [1, 1]} : vector<1x128xf32> to vector<1x32xf32>
    %22 = vector.extract_strided_slice %17 {offsets = [0, 96], sizes = [1, 32], strides = [1, 1]} : vector<1x128xf32> to vector<1x32xf32>
    %23 = arith.mulf %20, %9 : vector<1x32xf32>
    %24 = arith.mulf %19, %21 : vector<1x32xf32>
    %25 = arith.addf %23, %24 : vector<1x32xf32>
    %26 = math.tanh %25 : vector<1x32xf32>
    %27 = arith.mulf %22, %26 : vector<1x32xf32>
    %c0_15 = arith.constant 0 : index
    %c0_16 = arith.constant 0 : index
    %28 = vector.load %arg8[%c0_15, %c0_16] : memref<8x32xf32, #tpu.memory_space<vmem>>, vector<1x32xf32>
    tpu.vector_store %arg8[%c0_15, %c0_16], %27 {strides = array<i32>} : memref<8x32xf32, #tpu.memory_space<vmem>>, vector<1x32xf32>,
    %cst_17 = arith.constant dense<0.000000e+00> : vector<1x128xf32>
    %29 = tpu.matmul %27, %7, %cst_17 {dimension_numbers = #tpu.dot_dimension_numbers<[1], [0], [0], [1], [0, 0, 1, 1], [], []>} : vector<1x32xf32>, vector<32x128xf32>, vector<1x128xf32> -> vector<1x128xf32>
    %c1 = arith.constant 1 : index
    %c0_18 = arith.constant 0 : index
    %30 = vector.load %arg7[%c1, %c0_18] : memref<8x128xf32, #tpu.memory_space<vmem>>, vector<1x128xf32>
    %31 = arith.addf %29, %30 : vector<1x128xf32>
    %32 = arith.negf %31 : vector<1x128xf32>
    %33 = math.exp %32 : vector<1x128xf32>
    %cst_19 = arith.constant 1.000000e+00 : f32
    %34 = vector.broadcast %cst_19 : f32 to vector<1x128xf32>
    %35 = arith.addf %34, %33 : vector<1x128xf32>
    %36 = arith.divf %34, %35 : vector<1x128xf32>
    %37 = math.tanh %31 : vector<1x128xf32>
    %38 = vector.extract_strided_slice %36 {offsets = [0, 0], sizes = [1, 32], strides = [1, 1]} : vector<1x128xf32> to vector<1x32xf32>
    %39 = vector.extract_strided_slice %36 {offsets = [0, 32], sizes = [1, 32], strides = [1, 1]} : vector<1x128xf32> to vector<1x32xf32>
    %40 = vector.extract_strided_slice %37 {offsets = [0, 64], sizes = [1, 32], strides = [1, 1]} : vector<1x128xf32> to vector<1x32xf32>
    %41 = vector.extract_strided_slice %36 {offsets = [0, 96], sizes = [1, 32], strides = [1, 1]} : vector<1x128xf32> to vector<1x32xf32>
    %42 = arith.mulf %39, %25 : vector<1x32xf32>
    %43 = arith.mulf %38, %40 : vector<1x32xf32>
    %44 = arith.addf %42, %43 : vector<1x32xf32>
    %45 = math.tanh %44 : vector<1x32xf32>
    %46 = arith.mulf %41, %45 : vector<1x32xf32>
    %c1_20 = arith.constant 1 : index
    %c0_21 = arith.constant 0 : index
    %47 = vector.load %arg8[%c1_20, %c0_21] : memref<8x32xf32, #tpu.memory_space<vmem>>, vector<1x32xf32>
    tpu.vector_store %arg8[%c1_20, %c0_21], %46 {strides = array<i32>} : memref<8x32xf32, #tpu.memory_space<vmem>>, vector<1x32xf32>,
    %cst_22 = arith.constant dense<0.000000e+00> : vector<1x128xf32>
    %48 = tpu.matmul %46, %7, %cst_22 {dimension_numbers = #tpu.dot_dimension_numbers<[1], [0], [0], [1], [0, 0, 1, 1], [], []>} : vector<1x32xf32>, vector<32x128xf32>, vector<1x128xf32> -> vector<1x128xf32>
    %c2 = arith.constant 2 : index
    %c0_23 = arith.constant 0 : index
    %49 = vector.load %arg7[%c2, %c0_23] : memref<8x128xf32, #tpu.memory_space<vmem>>, vector<1x128xf32>
    %50 = arith.addf %48, %49 : vector<1x128xf32>
    %51 = arith.negf %50 : vector<1x128xf32>
    %52 = math.exp %51 : vector<1x128xf32>
    %cst_24 = arith.constant 1.000000e+00 : f32
    %53 = vector.broadcast %cst_24 : f32 to vector<1x128xf32>
    %54 = arith.addf %53, %52 : vector<1x128xf32>
    %55 = arith.divf %53, %54 : vector<1x128xf32>
    %56 = math.tanh %50 : vector<1x128xf32>
    %57 = vector.extract_strided_slice %55 {offsets = [0, 0], sizes = [1, 32], strides = [1, 1]} : vector<1x128xf32> to vector<1x32xf32>
    %58 = vector.extract_strided_slice %55 {offsets = [0, 32], sizes = [1, 32], strides = [1, 1]} : vector<1x128xf32> to vector<1x32xf32>
    %59 = vector.extract_strided_slice %56 {offsets = [0, 64], sizes = [1, 32], strides = [1, 1]} : vector<1x128xf32> to vector<1x32xf32>
    %60 = vector.extract_strided_slice %55 {offsets = [0, 96], sizes = [1, 32], strides = [1, 1]} : vector<1x128xf32> to vector<1x32xf32>
    %61 = arith.mulf %58, %44 : vector<1x32xf32>
    %62 = arith.mulf %57, %59 : vector<1x32xf32>
    %63 = arith.addf %61, %62 : vector<1x32xf32>
    %64 = math.tanh %63 : vector<1x32xf32>
    %65 = arith.mulf %60, %64 : vector<1x32xf32>
    %c2_25 = arith.constant 2 : index
    %c0_26 = arith.constant 0 : index
    %66 = vector.load %arg8[%c2_25, %c0_26] : memref<8x32xf32, #tpu.memory_space<vmem>>, vector<1x32xf32>
    tpu.vector_store %arg8[%c2_25, %c0_26], %65 {strides = array<i32>} : memref<8x32xf32, #tpu.memory_space<vmem>>, vector<1x32xf32>,
    %cst_27 = arith.constant dense<0.000000e+00> : vector<1x128xf32>
    %67 = tpu.matmul %65, %7, %cst_27 {dimension_numbers = #tpu.dot_dimension_numbers<[1], [0], [0], [1], [0, 0, 1, 1], [], []>} : vector<1x32xf32>, vector<32x128xf32>, vector<1x128xf32> -> vector<1x128xf32>
    %c3 = arith.constant 3 : index
    %c0_28 = arith.constant 0 : index
    %68 = vector.load %arg7[%c3, %c0_28] : memref<8x128xf32, #tpu.memory_space<vmem>>, vector<1x128xf32>
    %69 = arith.addf %67, %68 : vector<1x128xf32>
    %70 = arith.negf %69 : vector<1x128xf32>
    %71 = math.exp %70 : vector<1x128xf32>
    %cst_29 = arith.constant 1.000000e+00 : f32
    %72 = vector.broadcast %cst_29 : f32 to vector<1x128xf32>
    %73 = arith.addf %72, %71 : vector<1x128xf32>
    %74 = arith.divf %72, %73 : vector<1x128xf32>
    %75 = math.tanh %69 : vector<1x128xf32>
    %76 = vector.extract_strided_slice %74 {offsets = [0, 0], sizes = [1, 32], strides = [1, 1]} : vector<1x128xf32> to vector<1x32xf32>
    %77 = vector.extract_strided_slice %74 {offsets = [0, 32], sizes = [1, 32], strides = [1, 1]} : vector<1x128xf32> to vector<1x32xf32>
    %78 = vector.extract_strided_slice %75 {offsets = [0, 64], sizes = [1, 32], strides = [1, 1]} : vector<1x128xf32> to vector<1x32xf32>
    %79 = vector.extract_strided_slice %74 {offsets = [0, 96], sizes = [1, 32], strides = [1, 1]} : vector<1x128xf32> to vector<1x32xf32>
    %80 = arith.mulf %77, %63 : vector<1x32xf32>
    %81 = arith.mulf %76, %78 : vector<1x32xf32>
    %82 = arith.addf %80, %81 : vector<1x32xf32>
    %83 = math.tanh %82 : vector<1x32xf32>
    %84 = arith.mulf %79, %83 : vector<1x32xf32>
    %c3_30 = arith.constant 3 : index
    %c0_31 = arith.constant 0 : index
    %85 = vector.load %arg8[%c3_30, %c0_31] : memref<8x32xf32, #tpu.memory_space<vmem>>, vector<1x32xf32>
    tpu.vector_store %arg8[%c3_30, %c0_31], %84 {strides = array<i32>} : memref<8x32xf32, #tpu.memory_space<vmem>>, vector<1x32xf32>,
    %cst_32 = arith.constant dense<0.000000e+00> : vector<1x128xf32>
    %86 = tpu.matmul %84, %7, %cst_32 {dimension_numbers = #tpu.dot_dimension_numbers<[1], [0], [0], [1], [0, 0, 1, 1], [], []>} : vector<1x32xf32>, vector<32x128xf32>, vector<1x128xf32> -> vector<1x128xf32>
    %c4 = arith.constant 4 : index
    %c0_33 = arith.constant 0 : index
    %87 = vector.load %arg7[%c4, %c0_33] : memref<8x128xf32, #tpu.memory_space<vmem>>, vector<1x128xf32>
    %88 = arith.addf %86, %87 : vector<1x128xf32>
    %89 = arith.negf %88 : vector<1x128xf32>
    %90 = math.exp %89 : vector<1x128xf32>
    %cst_34 = arith.constant 1.000000e+00 : f32
    %91 = vector.broadcast %cst_34 : f32 to vector<1x128xf32>
    %92 = arith.addf %91, %90 : vector<1x128xf32>
    %93 = arith.divf %91, %92 : vector<1x128xf32>
    %94 = math.tanh %88 : vector<1x128xf32>
    %95 = vector.extract_strided_slice %93 {offsets = [0, 0], sizes = [1, 32], strides = [1, 1]} : vector<1x128xf32> to vector<1x32xf32>
    %96 = vector.extract_strided_slice %93 {offsets = [0, 32], sizes = [1, 32], strides = [1, 1]} : vector<1x128xf32> to vector<1x32xf32>
    %97 = vector.extract_strided_slice %94 {offsets = [0, 64], sizes = [1, 32], strides = [1, 1]} : vector<1x128xf32> to vector<1x32xf32>
    %98 = vector.extract_strided_slice %93 {offsets = [0, 96], sizes = [1, 32], strides = [1, 1]} : vector<1x128xf32> to vector<1x32xf32>
    %99 = arith.mulf %96, %82 : vector<1x32xf32>
    %100 = arith.mulf %95, %97 : vector<1x32xf32>
    %101 = arith.addf %99, %100 : vector<1x32xf32>
    %102 = math.tanh %101 : vector<1x32xf32>
    %103 = arith.mulf %98, %102 : vector<1x32xf32>
    %c4_35 = arith.constant 4 : index
    %c0_36 = arith.constant 0 : index
    %104 = vector.load %arg8[%c4_35, %c0_36] : memref<8x32xf32, #tpu.memory_space<vmem>>, vector<1x32xf32>
    tpu.vector_store %arg8[%c4_35, %c0_36], %103 {strides = array<i32>} : memref<8x32xf32, #tpu.memory_space<vmem>>, vector<1x32xf32>,
    %cst_37 = arith.constant dense<0.000000e+00> : vector<1x128xf32>
    %105 = tpu.matmul %103, %7, %cst_37 {dimension_numbers = #tpu.dot_dimension_numbers<[1], [0], [0], [1], [0, 0, 1, 1], [], []>} : vector<1x32xf32>, vector<32x128xf32>, vector<1x128xf32> -> vector<1x128xf32>
    %c5 = arith.constant 5 : index
    %c0_38 = arith.constant 0 : index
    %106 = vector.load %arg7[%c5, %c0_38] : memref<8x128xf32, #tpu.memory_space<vmem>>, vector<1x128xf32>
    %107 = arith.addf %105, %106 : vector<1x128xf32>
    %108 = arith.negf %107 : vector<1x128xf32>
    %109 = math.exp %108 : vector<1x128xf32>
    %cst_39 = arith.constant 1.000000e+00 : f32
    %110 = vector.broadcast %cst_39 : f32 to vector<1x128xf32>
    %111 = arith.addf %110, %109 : vector<1x128xf32>
    %112 = arith.divf %110, %111 : vector<1x128xf32>
    %113 = math.tanh %107 : vector<1x128xf32>
    %114 = vector.extract_strided_slice %112 {offsets = [0, 0], sizes = [1, 32], strides = [1, 1]} : vector<1x128xf32> to vector<1x32xf32>
    %115 = vector.extract_strided_slice %112 {offsets = [0, 32], sizes = [1, 32], strides = [1, 1]} : vector<1x128xf32> to vector<1x32xf32>
    %116 = vector.extract_strided_slice %113 {offsets = [0, 64], sizes = [1, 32], strides = [1, 1]} : vector<1x128xf32> to vector<1x32xf32>
    %117 = vector.extract_strided_slice %112 {offsets = [0, 96], sizes = [1, 32], strides = [1, 1]} : vector<1x128xf32> to vector<1x32xf32>
    %118 = arith.mulf %115, %101 : vector<1x32xf32>
    %119 = arith.mulf %114, %116 : vector<1x32xf32>
    %120 = arith.addf %118, %119 : vector<1x32xf32>
    %121 = math.tanh %120 : vector<1x32xf32>
    %122 = arith.mulf %117, %121 : vector<1x32xf32>
    %c5_40 = arith.constant 5 : index
    %c0_41 = arith.constant 0 : index
    %123 = vector.load %arg8[%c5_40, %c0_41] : memref<8x32xf32, #tpu.memory_space<vmem>>, vector<1x32xf32>
    tpu.vector_store %arg8[%c5_40, %c0_41], %122 {strides = array<i32>} : memref<8x32xf32, #tpu.memory_space<vmem>>, vector<1x32xf32>,
    %cst_42 = arith.constant dense<0.000000e+00> : vector<1x128xf32>
    %124 = tpu.matmul %122, %7, %cst_42 {dimension_numbers = #tpu.dot_dimension_numbers<[1], [0], [0], [1], [0, 0, 1, 1], [], []>} : vector<1x32xf32>, vector<32x128xf32>, vector<1x128xf32> -> vector<1x128xf32>
    %c6 = arith.constant 6 : index
    %c0_43 = arith.constant 0 : index
    %125 = vector.load %arg7[%c6, %c0_43] : memref<8x128xf32, #tpu.memory_space<vmem>>, vector<1x128xf32>
    %126 = arith.addf %124, %125 : vector<1x128xf32>
    %127 = arith.negf %126 : vector<1x128xf32>
    %128 = math.exp %127 : vector<1x128xf32>
    %cst_44 = arith.constant 1.000000e+00 : f32
    %129 = vector.broadcast %cst_44 : f32 to vector<1x128xf32>
    %130 = arith.addf %129, %128 : vector<1x128xf32>
    %131 = arith.divf %129, %130 : vector<1x128xf32>
    %132 = math.tanh %126 : vector<1x128xf32>
    %133 = vector.extract_strided_slice %131 {offsets = [0, 0], sizes = [1, 32], strides = [1, 1]} : vector<1x128xf32> to vector<1x32xf32>
    %134 = vector.extract_strided_slice %131 {offsets = [0, 32], sizes = [1, 32], strides = [1, 1]} : vector<1x128xf32> to vector<1x32xf32>
    %135 = vector.extract_strided_slice %132 {offsets = [0, 64], sizes = [1, 32], strides = [1, 1]} : vector<1x128xf32> to vector<1x32xf32>
    %136 = vector.extract_strided_slice %131 {offsets = [0, 96], sizes = [1, 32], strides = [1, 1]} : vector<1x128xf32> to vector<1x32xf32>
    %137 = arith.mulf %134, %120 : vector<1x32xf32>
    %138 = arith.mulf %133, %135 : vector<1x32xf32>
    %139 = arith.addf %137, %138 : vector<1x32xf32>
    %140 = math.tanh %139 : vector<1x32xf32>
    %141 = arith.mulf %136, %140 : vector<1x32xf32>
    %c6_45 = arith.constant 6 : index
    %c0_46 = arith.constant 0 : index
    %142 = vector.load %arg8[%c6_45, %c0_46] : memref<8x32xf32, #tpu.memory_space<vmem>>, vector<1x32xf32>
    tpu.vector_store %arg8[%c6_45, %c0_46], %141 {strides = array<i32>} : memref<8x32xf32, #tpu.memory_space<vmem>>, vector<1x32xf32>,
    %cst_47 = arith.constant dense<0.000000e+00> : vector<1x128xf32>
    %143 = tpu.matmul %141, %7, %cst_47 {dimension_numbers = #tpu.dot_dimension_numbers<[1], [0], [0], [1], [0, 0, 1, 1], [], []>} : vector<1x32xf32>, vector<32x128xf32>, vector<1x128xf32> -> vector<1x128xf32>
    %c7 = arith.constant 7 : index
    %c0_48 = arith.constant 0 : index
    %144 = vector.load %arg7[%c7, %c0_48] : memref<8x128xf32, #tpu.memory_space<vmem>>, vector<1x128xf32>
    %145 = arith.addf %143, %144 : vector<1x128xf32>
    %146 = arith.negf %145 : vector<1x128xf32>
    %147 = math.exp %146 : vector<1x128xf32>
    %cst_49 = arith.constant 1.000000e+00 : f32
    %148 = vector.broadcast %cst_49 : f32 to vector<1x128xf32>
    %149 = arith.addf %148, %147 : vector<1x128xf32>
    %150 = arith.divf %148, %149 : vector<1x128xf32>
    %151 = math.tanh %145 : vector<1x128xf32>
    %152 = vector.extract_strided_slice %150 {offsets = [0, 0], sizes = [1, 32], strides = [1, 1]} : vector<1x128xf32> to vector<1x32xf32>
    %153 = vector.extract_strided_slice %150 {offsets = [0, 32], sizes = [1, 32], strides = [1, 1]} : vector<1x128xf32> to vector<1x32xf32>
    %154 = vector.extract_strided_slice %151 {offsets = [0, 64], sizes = [1, 32], strides = [1, 1]} : vector<1x128xf32> to vector<1x32xf32>
    %155 = vector.extract_strided_slice %150 {offsets = [0, 96], sizes = [1, 32], strides = [1, 1]} : vector<1x128xf32> to vector<1x32xf32>
    %156 = arith.mulf %153, %139 : vector<1x32xf32>
    %157 = arith.mulf %152, %154 : vector<1x32xf32>
    %158 = arith.addf %156, %157 : vector<1x32xf32>
    %159 = math.tanh %158 : vector<1x32xf32>
    %160 = arith.mulf %155, %159 : vector<1x32xf32>
    %c7_50 = arith.constant 7 : index
    %c0_51 = arith.constant 0 : index
    %161 = vector.load %arg8[%c7_50, %c0_51] : memref<8x32xf32, #tpu.memory_space<vmem>>, vector<1x32xf32>
    tpu.vector_store %arg8[%c7_50, %c0_51], %160 {strides = array<i32>} : memref<8x32xf32, #tpu.memory_space<vmem>>, vector<1x32xf32>,
    %c0_52 = arith.constant 0 : index
    %c0_53 = arith.constant 0 : index
    %162 = vector.load %arg8[%c0_52, %c0_53] : memref<8x32xf32, #tpu.memory_space<vmem>>, vector<8x32xf32>
    %c0_54 = arith.constant 0 : index
    %c0_55 = arith.constant 0 : index
    %163 = vector.load %arg4[%c0_54, %c0_55] : memref<32x128xf32, #tpu.memory_space<vmem>>, vector<32x128xf32>
    %cst_56 = arith.constant dense<0.000000e+00> : vector<8x128xf32>
    %164 = tpu.matmul %162, %163, %cst_56 {dimension_numbers = #tpu.dot_dimension_numbers<[1], [0], [0], [1], [0, 0, 1, 1], [], []>} : vector<8x32xf32>, vector<32x128xf32>, vector<8x128xf32> -> vector<8x128xf32>
    %c0_57 = arith.constant 0 : index
    %c0_58 = arith.constant 0 : index
    %165 = vector.load %arg5[%c0_57, %c0_58] : memref<1x128xf32, #tpu.memory_space<vmem>>, vector<1x128xf32>
    %166 = vector.broadcast %165 : vector<1x128xf32> to vector<8x128xf32>
    %167 = arith.addf %164, %166 : vector<8x128xf32>
    %cst_59 = arith.constant dense<0xFF800000> : vector<8xf32>
    %168 = vector.multi_reduction <maximumf>, %167, %cst_59 [1] : vector<8x128xf32> to vector<8xf32>
    %169 = vector.shape_cast %168 : vector<8xf32> to vector<8x1xf32>
    %170 = vector.broadcast %169 : vector<8x1xf32> to vector<8x128xf32>
    %171 = arith.subf %167, %170 : vector<8x128xf32>
    %172 = math.exp %171 : vector<8x128xf32>
    %cst_60 = arith.constant dense<0.000000e+00> : vector<8xf32>
    %173 = vector.multi_reduction <add>, %172, %cst_60 [1] : vector<8x128xf32> to vector<8xf32>
    %174 = vector.shape_cast %173 : vector<8xf32> to vector<8x1xf32>
    %175 = math.log %174 : vector<8x1xf32>
    %176 = arith.addf %175, %169 : vector<8x1xf32>
    %177 = vector.broadcast %176 : vector<8x1xf32> to vector<8x128xf32>
    %178 = arith.subf %167, %177 : vector<8x128xf32>
    %c0_61 = arith.constant 0 : index
    %c0_62 = arith.constant 0 : index
    %179 = vector.load %arg6[%c0_61, %c0_62] : memref<8x128xf32, #tpu.memory_space<vmem>>, vector<8x128xf32>
    tpu.vector_store %arg6[%c0_61, %c0_62], %178 {strides = array<i32>} : memref<8x128xf32, #tpu.memory_space<vmem>>, vector<8x128xf32>,
    return
  }
}

</mosaic_0001>

<bundles_post_ra>
// kernel: tpu_custom_call.1
= control target key start
LH: loop header
LB: loop body
LE: loop exit
PB: predicated region body
PF: predicated region fallthrough
CT: control target
= control target key end

     0   :  { %11 = vsyncpa [#allocation5], 0  ;;  %s1682_s0 = inlined_call_operand.hbm [shape: f32[8,16], index: 0, kind: input, shape index: {}]   ;;  %s1683_s1 = inlined_call_operand.hbm [shape: f32[16,128], index: 1, kind: input, shape index: {}]   ;;  %s1684_s2 = inlined_call_operand.hbm [shape: f32[32,128], index: 2, kind: input, shape index: {}]   ;;  %s1685_s3 = inlined_call_operand.vmem [shape: f32[1,128], index: 3, kind: input, shape index: {}]   ;;  %s1686_s4 = inlined_call_operand.hbm [shape: f32[32,128], index: 4, kind: input, shape index: {}]   ;;  %s1687_s5 = inlined_call_operand.vmem [shape: f32[1,128], index: 5, kind: input, shape index: {}]   ;;  %s1688_s6 = inlined_call_operand.hbm [shape: f32[8,128], index: 6, kind: output, shape index: {}]  }
   0x1   :  { %12 = vsyncpa [#allocation8], 0 }
   0x2   :  { %13 = vsyncpa [#allocation11], 0 }
   0x3   :  { %14 = vsyncpa [#allocation6], 0  ;;  %s1459_s21 = smov [#allocation7]  }
   0x4   :  { %s30_s22 = sshll.u32 %s1459_s21, 4  ;;  %s31_s22 = int_to_ptr.vmem [resolvable:$true] %s30_s22 }
   0x5   :  { %s1359_s23 = scalar_lea.vmem %s31_s22, 256  ;;  %p1364_p1 = scmp.lt.s32.totalorder %s31_s22, %s31_s22 }
   0x6   :  { %p1360_p0 = scmp.ne.s32.totalorder %s31_s22, %s1359_s23  ;;  %p1365_p2 = scmp.lt.s32.totalorder %s1359_s23, %s1359_s23 }
   0x8   :  { %p1366_p3 = por %p1365_p2, %p1364_p1 }
   0xa   :  { %p1367_p4 = pnand %p1366_p3, %p1360_p0 }
   0xc   :  { %1370 = shalt.err (!%p1367_p4)
}
   0xd   :  { %s1460_s24 = smov 128   ;;  %s1461_s25 = smov 8  }
   0xe   :  { %36 = dma.hbm_to_vmem [thread:$0]  %s1683_s1, 256, %s31_s22, [#allocation8], %s1460_s24, %s1460_s24, %s1461_s25  }
   0xf   :  { %s1462_s28 = smov [#allocation4]   ;;  %s1463_s30 = smov [#allocation9]  }
  0x10   :  { %s21_s29 = sshll.u32 %s1462_s28, 4  ;;  %s42_s7 = sshll.u32 %s1463_s30, 4  ;;  %s22_s29 = int_to_ptr.vmem [resolvable:$true] %s21_s29  ;;  %s43_s7 = int_to_ptr.vmem [resolvable:$true] %s42_s7 }
  0x11   :  { %s1379_s8 = scalar_lea.vmem %s22_s29, 128  ;;  %p1384_p6 = scmp.lt.s32.totalorder %s22_s29, %s22_s29 }
  0x12   :  { %p1380_p5 = scmp.ne.s32.totalorder %s22_s29, %s1379_s8  ;;  %p1385_p7 = scmp.lt.s32.totalorder %s1379_s8, %s1379_s8 }
  0x14   :  { %p1386_p8 = por %p1385_p7, %p1384_p6 }
  0x16   :  { %p1387_p9 = pnand %p1386_p8, %p1380_p5 }
  0x18   :  { %1390 = shalt.err (!%p1387_p9)
}
  0x19   :  { %24 = dma.hbm_to_vmem [thread:$0]  %s1682_s0, 128, %s22_s29, [#allocation5]  }
  0x1a   :  { %s1399_s11 = scalar_lea.vmem %s43_s7, 512  ;;  %p1404_p11 = scmp.lt.s32.totalorder %s43_s7, %s43_s7 }
  0x1b   :  { %p1400_p10 = scmp.ne.s32.totalorder %s43_s7, %s1399_s11  ;;  %p1405_p12 = scmp.lt.s32.totalorder %s1399_s11, %s1399_s11 }
  0x1d   :  { %p1406_p13 = por %p1405_p12, %p1404_p11 }
  0x1f   :  { %p1407_p0 = pnand %p1406_p13, %p1400_p10 }
  0x21   :  { %1410 = shalt.err (!%p1407_p0)
}
  0x22   :  { %48 = dma.hbm_to_vmem [thread:$0]  %s1684_s2, 512, %s43_s7, [#allocation8], %s1460_s24, %s1460_s24, %s1461_s25  }
  0x23   :  { %s1464_s13 = smov [#allocation10]  }
  0x24   :  { %s56_s14 = sshll.u32 %s1464_s13, 4  ;;  %s57_s14 = int_to_ptr.vmem [resolvable:$true] %s56_s14 }
  0x25   :  { %s1419_s15 = scalar_lea.vmem %s57_s14, 512  ;;  %p1424_p2 = scmp.lt.s32.totalorder %s57_s14, %s57_s14 }
  0x26   :  { %p1420_p1 = scmp.ne.s32.totalorder %s57_s14, %s1419_s15  ;;  %p1425_p3 = scmp.lt.s32.totalorder %s1419_s15, %s1419_s15 }
  0x28   :  { %p1426_p4 = por %p1425_p3, %p1424_p2 }
  0x2a   :  { %p1427_p5 = pnand %p1426_p4, %p1420_p1 }
  0x2c   :  { %1430 = shalt.err (!%p1427_p5)
}
  0x2d   :  { %62 = dma.hbm_to_vmem [thread:$0]  %s1686_s4, 512, %s57_s14, [#allocation11], %s1460_s24, %s1460_s24, %s1461_s25  }
  0x2e   :  { %1451 = dma.done.wait [#allocation5], 128  }
  0x2f   :  { %1452 = vsyncadd [#allocation5], 4294967168 }
  0x30   :  { %1453 = dma.done.wait [#allocation8], 768  }
  0x31   :  { %1454 = vsyncadd [#allocation8], 4294966528 }
  0x32   :  { %1455 = dma.done.wait [#allocation11], 512  }
  0x33   :  { %1456 = vsyncadd [#allocation11], 4294966784  ;;  %v1465_v0 = vmov 0.0   ;;  %vm1466_vm0 = vmmov 0   ;;  %v79_v1 = vld [vmem:[#allocation7 + $0x8] sm:$0xff]  ;;  %v78_v2 = vld [vmem:[#allocation7] sm:$0xff] }
  0x34   :  { %1166 = vmatprep.subr.mxu0 %v1465_v0  ;;  %1170 = vmatprep.mubr.msk.f32.mxu0 %vm1466_vm0, %v1465_v0  ;;  %v77_v3 = vld [vmem:[#allocation4] sm:$0xff]  ;;  %vm87_vm1 = vcmask 130048   ;;  %v1532_v4 = vld [vmem:[#allocation9 + $0x18] sm:$0xff]  ;;  %v1534_v5 = vld [vmem:[#allocation9 + $0x10] sm:$0xff]  ;;  %s1467_s17 = smov 64   ;;  %vm269_vm2 = vcmask 253952  }
  0x35   :  { %1173 = vmatprep.subr.mxu1 %v1465_v0  ;;  %1181 = vmatprep.mubr.msk.f32.mxu1 %vm1466_vm0, %v1465_v0  ;;  %v1539_v6 = vld [vmem:[#allocation9 + $0x8] sm:$0xff]  ;;  %v1543_v7 = vld [vmem:[#allocation9] sm:$0xff]  ;;  %v1099_v8 = vld [vmem:[%s1685_s3] ss:$0 sm:$0xff]  ;;  %s1468_s3 = smov 32   ;;  %vm167_vm3 = vcmask 261120  }
  0x36   :  { %1167 = vmatpush3.msra.mxu0 %v79_v1  ;;  %1174 = vmatpush3.msra.mxu1 %v1532_v4  ;;  %s1469_s20 = smov [#allocation12]  }
  0x37   :  { %1168 = vmatprep.subr.mxu0 %v1465_v0  ;;  %1175 = vmatprep.subr.mxu1 %v1465_v0  ;;  %s1088_s21 = sshll.u32 %s1469_s20, 4  ;;  %s1089_s21 = int_to_ptr.vmem [resolvable:$true] %s1088_s21 }
  0x38   :  { %1169 = vmatpush3.msra.mxu0 %v78_v2  ;;  %1176 = vmatpush3.msra.mxu1 %v1534_v5  ;;  %p1436_p7 = scmp.lt.s32.totalorder %s1089_s21, %s1089_s21 }
  0x39   :  { %1171 = vmatmul.mubr.msk.f32.vlgmr.msra.gmra.mxu0 %vm87_vm1, %v77_v3  ;;  %1177 = vmatprep.subr.mxu1 %v1465_v0 }
  0x3a   :  { %1184 = vmatprep.subr.mxu0 %v1465_v0  ;;  %1178 = vmatpush3.msra.mxu1 %v1539_v6 }
  0x3b   :  { %1185 = vmatpush3.msra.mxu0 %v1532_v4  ;;  %1179 = vmatprep.subr.mxu1 %v1465_v0 }
  0x3c   :  { %1186 = vmatprep.subr.mxu0 %v1465_v0  ;;  %1180 = vmatpush3.msra.mxu1 %v1543_v7 }
  0x3d   :  { %1187 = vmatpush3.msra.mxu0 %v1534_v5  ;;  %1182 = vmatmul.mubr.f32.vlgmr.msra.gmra.mxu1 %v1465_v0 }
  0x3e   :  { %1188 = vmatprep.subr.mxu0 %v1465_v0  ;;  %1192 = vmatprep.mubr.msk.f32.mxu0 %vm1466_vm0, %v1465_v0 }
  0x3f   :  { %1189 = vmatpush3.msra.mxu0 %v1539_v6  ;;  %1195 = vmatprep.subr.mxu1 %v1465_v0 }
  0x40   :  { %1190 = vmatprep.subr.mxu0 %v1465_v0  ;;  %1196 = vmatpush3.msra.mxu1 %v1532_v4 }
  0x41   :  { %1191 = vmatpush3.msra.mxu0 %v1543_v7  ;;  %1197 = vmatprep.subr.mxu1 %v1465_v0 }
  0x42   :  { %1203 = vmatprep.mubr.msk.f32.mxu1 %vm1466_vm0, %v1465_v0  ;;  %1198 = vmatpush3.msra.mxu1 %v1534_v5 }
  0x43   :  { %1206 = vmatprep.subr.mxu0 %v1465_v0  ;;  %1199 = vmatprep.subr.mxu1 %v1465_v0 }
  0x44   :  { %1200 = vmatpush3.msra.mxu1 %v1539_v6 }
  0x45   :  { %1201 = vmatprep.subr.mxu1 %v1465_v0 }
  0x46   :  { %1202 = vmatpush3.msra.mxu1 %v1543_v7 }
  0x47   :  { %1217 = vmatprep.subr.mxu1 %v1465_v0 }
  0xf9   :  { %v157_v9 = vpop.f32.mrf.mxu0 }
  0xfa   :  { %v158_v10 = vadd.f32 %v1099_v8, %v157_v9 }
  0xfb   :  { %v1172_v11 = vpop.f32.mrf.mxu0 }
  0xfc   :  { %161 = vst [vmem:[#allocation2] sm:$0xff] %v158_v10 }
  0xfd   :  { %v237_v12 = vpop.f32.mrf.mxu1 }
  0xff   :  { %v1183_v13 = vpop.f32.mrf.mxu1 }
 0x103   :  { %v166_v14 = vld [vmem:[#allocation2] sm:$0x1]  ;;  %v271_v30 = vld [vmem:[#allocation2 + $0x1] sm:$0x1]  ;;  %v373_v48 = vld [vmem:[#allocation2 + $0x2] sm:$0x1] }
 0x104   :  { %v238_v15 = vadd.f32 %v237_v12, %v166_v14  ;;  %v475_v3 = vld [vmem:[#allocation2 + $0x3] sm:$0x1] }
 0x106   :  { %1283 = vtanh.f32 %v238_v15  ;;  %v1101_v17 = vmul.f32 -1.442695, %v238_v15 }
 0x108   :  { %1285 = vpow2.f32 %v1101_v17 }
 0x113   :  { %v1284_v16 = vpop.eup %1283 }
 0x114   :  { %250 = vrot.lane.b32.xlu0 %v1284_v16, %s1467_s17 }
 0x115   :  { %v1286_v18 = vpop.eup %1285 }
 0x116   :  { %v244_v19 = vadd.f32 1.0, %v1286_v18 }
 0x118   :  { %1287 = vrcp.f32 %v244_v19 }
 0x125   :  { %v1288_v20 = vpop.eup %1287 }
 0x126   :  { %v248_v23 = vmul.f32 0.0, %v1288_v20 }
 0x186   :  { %v251_v21 = vpop.permute.xlu0 %250 }
 0x187   :  { %v253_v22 = vmul.f32 %v1288_v20, %v251_v21 }
 0x189   :  { %255 = vrot.lane.b32.xlu0 %v253_v22, %s1468_s3 }
 0x1fb   :  { %v256_v24 = vpop.permute.xlu0 %255 }
 0x1fc   :  { %v258_v25 = vadd.f32 %v256_v24, %v248_v23 }
 0x1fe   :  { %1289 = vtanh.f32 %v258_v25 }
 0x20b   :  { %v1290_v26 = vpop.eup %1289 }
 0x20c   :  { %261 = vrot.lane.b32.xlu1 %v1290_v26, %s1467_s17 }
 0x27e   :  { %v262_v27 = vpop.permute.xlu1 %261 }
 0x27f   :  { %v264_v28 = vmul.f32 %v1288_v20, %v262_v27 }
 0x281   :  { %266 = vrot.lane.b32.xlu1 %v264_v28, %s1468_s3 }
 0x2f3   :  { %v267_v29 = vpop.permute.xlu1 %266 }
 0x2f4   :  { %270 = vst.msk [vmem:[#allocation3] sm:$0x1] %vm269_vm2, %v267_v29  ;;  %1193 = vmatmul.mubr.msk.f32.vlgmr.msra.gmra.mxu0 %vm167_vm3, %v267_v29 }
 0x2f5   :  { %1207 = vmatpush3.msra.mxu0 %v1532_v4  ;;  %1214 = vmatprep.mubr.msk.f32.mxu0 %vm1466_vm0, %v1465_v0 }
 0x2f6   :  { %1208 = vmatprep.subr.mxu0 %v1465_v0 }
 0x2f7   :  { %1209 = vmatpush3.msra.mxu0 %v1534_v5 }
 0x2f8   :  { %1210 = vmatprep.subr.mxu0 %v1465_v0 }
 0x2f9   :  { %1211 = vmatpush3.msra.mxu0 %v1539_v6 }
 0x2fa   :  { %1212 = vmatprep.subr.mxu0 %v1465_v0 }
 0x2fb   :  { %1213 = vmatpush3.msra.mxu0 %v1543_v7 }
 0x2fc   :  { %1228 = vmatprep.subr.mxu0 %v1465_v0 }
 0x3b4   :  { %v340_v31 = vpop.f32.mrf.mxu0 }
 0x3b5   :  { %v341_v32 = vadd.f32 %v340_v31, %v271_v30 }
 0x3b6   :  { %v1194_v33 = vpop.f32.mrf.mxu0 }
 0x3b7   :  { %1291 = vtanh.f32 %v341_v32  ;;  %v1103_v35 = vmul.f32 -1.442695, %v341_v32 }
 0x3b9   :  { %1293 = vpow2.f32 %v1103_v35 }
 0x3c4   :  { %v1292_v34 = vpop.eup %1291 }
 0x3c5   :  { %353 = vrot.lane.b32.xlu0 %v1292_v34, %s1467_s17 }
 0x3c6   :  { %v1294_v36 = vpop.eup %1293 }
 0x3c7   :  { %v347_v37 = vadd.f32 1.0, %v1294_v36 }
 0x3c9   :  { %1295 = vrcp.f32 %v347_v37 }
 0x3d6   :  { %v1296_v38 = vpop.eup %1295 }
 0x3d7   :  { %v351_v41 = vmul.f32 %v1296_v38, %v258_v25  ;;  %v577_v25 = vld [vmem:[#allocation2 + $0x4] sm:$0x1] }
 0x437   :  { %v354_v39 = vpop.permute.xlu0 %353 }
 0x438   :  { %v356_v40 = vmul.f32 %v1296_v38, %v354_v39 }
 0x43a   :  { %358 = vrot.lane.b32.xlu1 %v356_v40, %s1468_s3 }
 0x4ac   :  { %v359_v42 = vpop.permute.xlu1 %358 }
 0x4ad   :  { %v361_v43 = vadd.f32 %v359_v42, %v351_v41 }
 0x4af   :  { %1297 = vtanh.f32 %v361_v43 }
 0x4bc   :  { %v1298_v44 = vpop.eup %1297 }
 0x4bd   :  { %364 = vrot.lane.b32.xlu0 %v1298_v44, %s1467_s17 }
 0x52f   :  { %v365_v45 = vpop.permute.xlu0 %364 }
 0x530   :  { %v367_v46 = vmul.f32 %v1296_v38, %v365_v45 }
 0x532   :  { %369 = vrot.lane.b32.xlu1 %v367_v46, %s1468_s3 }
 0x5a4   :  { %v370_v47 = vpop.permute.xlu1 %369 }
 0x5a5   :  { %372 = vst.msk [vmem:[#allocation3 + $0x1] sm:$0x1] %vm269_vm2, %v370_v47  ;;  %1204 = vmatmul.mubr.msk.f32.vlgmr.msra.gmra.mxu1 %vm167_vm3, %v370_v47 }
 0x5a6   :  { %1218 = vmatpush3.msra.mxu1 %v1532_v4  ;;  %1225 = vmatprep.mubr.msk.f32.mxu1 %vm1466_vm0, %v1465_v0 }
 0x5a7   :  { %1219 = vmatprep.subr.mxu1 %v1465_v0 }
 0x5a8   :  { %1220 = vmatpush3.msra.mxu1 %v1534_v5 }
 0x5a9   :  { %1221 = vmatprep.subr.mxu1 %v1465_v0 }
 0x5aa   :  { %1222 = vmatpush3.msra.mxu1 %v1539_v6 }
 0x5ab   :  { %1223 = vmatprep.subr.mxu1 %v1465_v0 }
 0x5ac   :  { %1224 = vmatpush3.msra.mxu1 %v1543_v7 }
 0x5ad   :  { %1239 = vmatprep.subr.mxu1 %v1465_v0 }
 0x665   :  { %v442_v49 = vpop.f32.mrf.mxu1 }
 0x666   :  { %v443_v50 = vadd.f32 %v442_v49, %v373_v48 }
 0x667   :  { %v1205_v51 = vpop.f32.mrf.mxu1 }
 0x668   :  { %1299 = vtanh.f32 %v443_v50  ;;  %v1105_v53 = vmul.f32 -1.442695, %v443_v50 }
 0x66a   :  { %1301 = vpow2.f32 %v1105_v53 }
 0x675   :  { %v1300_v52 = vpop.eup %1299 }
 0x676   :  { %455 = vrot.lane.b32.xlu0 %v1300_v52, %s1467_s17 }
 0x677   :  { %v1302_v54 = vpop.eup %1301 }
 0x678   :  { %v449_v55 = vadd.f32 1.0, %v1302_v54 }
 0x67a   :  { %1303 = vrcp.f32 %v449_v55 }
 0x687   :  { %v1304_v56 = vpop.eup %1303 }
 0x688   :  { %v453_v59 = vmul.f32 %v1304_v56, %v361_v43  ;;  %v679_v43 = vld [vmem:[#allocation2 + $0x5] sm:$0x1] }
 0x6e8   :  { %v456_v57 = vpop.permute.xlu0 %455 }
 0x6e9   :  { %v458_v58 = vmul.f32 %v1304_v56, %v456_v57  ;;  %v781_v57 = vld [vmem:[#allocation2 + $0x6] sm:$0x1] }
 0x6eb   :  { %460 = vrot.lane.b32.xlu1 %v458_v58, %s1468_s3 }
 0x75d   :  { %v461_v60 = vpop.permute.xlu1 %460 }
 0x75e   :  { %v463_v61 = vadd.f32 %v461_v60, %v453_v59 }
 0x760   :  { %1305 = vtanh.f32 %v463_v61 }
 0x76d   :  { %v1306_v62 = vpop.eup %1305 }
 0x76e   :  { %466 = vrot.lane.b32.xlu0 %v1306_v62, %s1467_s17 }
 0x7e0   :  { %v467_v63 = vpop.permute.xlu0 %466 }
 0x7e1   :  { %v469_v1 = vmul.f32 %v1304_v56, %v467_v63 }
 0x7e3   :  { %471 = vrot.lane.b32.xlu1 %v469_v1, %s1468_s3 }
 0x855   :  { %v472_v2 = vpop.permute.xlu1 %471 }
 0x856   :  { %474 = vst.msk [vmem:[#allocation3 + $0x2] sm:$0x1] %vm269_vm2, %v472_v2  ;;  %1215 = vmatmul.mubr.msk.f32.vlgmr.msra.gmra.mxu0 %vm167_vm3, %v472_v2 }
 0x857   :  { %1229 = vmatpush3.msra.mxu0 %v1532_v4  ;;  %1236 = vmatprep.mubr.msk.f32.mxu0 %vm1466_vm0, %v1465_v0 }
 0x858   :  { %1230 = vmatprep.subr.mxu0 %v1465_v0 }
 0x859   :  { %1231 = vmatpush3.msra.mxu0 %v1534_v5 }
 0x85a   :  { %1232 = vmatprep.subr.mxu0 %v1465_v0 }
 0x85b   :  { %1233 = vmatpush3.msra.mxu0 %v1539_v6 }
 0x85c   :  { %1234 = vmatprep.subr.mxu0 %v1465_v0 }
 0x85d   :  { %1235 = vmatpush3.msra.mxu0 %v1543_v7 }
 0x85e   :  { %1250 = vmatprep.subr.mxu0 %v1465_v0 }
 0x916   :  { %v544_v8 = vpop.f32.mrf.mxu0 }
 0x917   :  { %v545_v9 = vadd.f32 %v544_v8, %v475_v3 }
 0x918   :  { %v1216_v10 = vpop.f32.mrf.mxu0 }
 0x919   :  { %1307 = vtanh.f32 %v545_v9  ;;  %v1107_v12 = vmul.f32 -1.442695, %v545_v9 }
 0x91b   :  { %1309 = vpow2.f32 %v1107_v12 }
 0x926   :  { %v1308_v11 = vpop.eup %1307 }
 0x927   :  { %557 = vrot.lane.b32.xlu0 %v1308_v11, %s1467_s17 }
 0x928   :  { %v1310_v13 = vpop.eup %1309 }
 0x929   :  { %v551_v14 = vadd.f32 1.0, %v1310_v13 }
 0x92b   :  { %1311 = vrcp.f32 %v551_v14 }
 0x938   :  { %v1312_v15 = vpop.eup %1311 }
 0x939   :  { %v555_v18 = vmul.f32 %v1312_v15, %v463_v61 }
 0x999   :  { %v558_v16 = vpop.permute.xlu0 %557 }
 0x99a   :  { %v560_v17 = vmul.f32 %v1312_v15, %v558_v16  ;;  %v883_v16 = vld [vmem:[#allocation2 + $0x7] sm:$0x1] }
 0x99c   :  { %562 = vrot.lane.b32.xlu1 %v560_v17, %s1468_s3 }
 0xa0e   :  { %v563_v19 = vpop.permute.xlu1 %562 }
 0xa0f   :  { %v565_v20 = vadd.f32 %v563_v19, %v555_v18 }
 0xa11   :  { %1313 = vtanh.f32 %v565_v20 }
 0xa1e   :  { %v1314_v21 = vpop.eup %1313 }
 0xa1f   :  { %568 = vrot.lane.b32.xlu0 %v1314_v21, %s1467_s17 }
 0xa91   :  { %v569_v22 = vpop.permute.xlu0 %568 }
 0xa92   :  { %v571_v23 = vmul.f32 %v1312_v15, %v569_v22 }
 0xa94   :  { %573 = vrot.lane.b32.xlu1 %v571_v23, %s1468_s3 }
 0xb06   :  { %v574_v24 = vpop.permute.xlu1 %573 }
 0xb07   :  { %576 = vst.msk [vmem:[#allocation3 + $0x3] sm:$0x1] %vm269_vm2, %v574_v24  ;;  %1226 = vmatmul.mubr.msk.f32.vlgmr.msra.gmra.mxu1 %vm167_vm3, %v574_v24 }
 0xb08   :  { %1240 = vmatpush3.msra.mxu1 %v1532_v4  ;;  %1247 = vmatprep.mubr.msk.f32.mxu1 %vm1466_vm0, %v1465_v0 }
 0xb09   :  { %1241 = vmatprep.subr.mxu1 %v1465_v0 }
 0xb0a   :  { %1242 = vmatpush3.msra.mxu1 %v1534_v5 }
 0xb0b   :  { %1243 = vmatprep.subr.mxu1 %v1465_v0 }
 0xb0c   :  { %1244 = vmatpush3.msra.mxu1 %v1539_v6 }
 0xb0d   :  { %1245 = vmatprep.subr.mxu1 %v1465_v0 }
 0xb0e   :  { %1246 = vmatpush3.msra.mxu1 %v1543_v7 }
 0xb0f   :  { %1261 = vmatprep.subr.mxu1 %v1465_v0 }
 0xbc7   :  { %v646_v26 = vpop.f32.mrf.mxu1 }
 0xbc8   :  { %v647_v27 = vadd.f32 %v646_v26, %v577_v25 }
 0xbc9   :  { %v1227_v28 = vpop.f32.mrf.mxu1 }
 0xbca   :  { %1315 = vtanh.f32 %v647_v27  ;;  %v1109_v30 = vmul.f32 -1.442695, %v647_v27 }
 0xbcc   :  { %1317 = vpow2.f32 %v1109_v30 }
 0xbd7   :  { %v1316_v29 = vpop.eup %1315 }
 0xbd8   :  { %659 = vrot.lane.b32.xlu0 %v1316_v29, %s1467_s17 }
 0xbd9   :  { %v1318_v31 = vpop.eup %1317 }
 0xbda   :  { %v653_v32 = vadd.f32 1.0, %v1318_v31  ;;  %v989_v31 = vld [vmem:[#allocation10 + $0x18] sm:$0xff] }
 0xbdc   :  { %1319 = vrcp.f32 %v653_v32  ;;  %v988_v32 = vld [vmem:[#allocation10 + $0x10] sm:$0xff] }
 0xbe9   :  { %v1320_v33 = vpop.eup %1319 }
 0xbea   :  { %v657_v36 = vmul.f32 %v1320_v33, %v565_v20 }
 0xc4a   :  { %v660_v34 = vpop.permute.xlu0 %659 }
 0xc4b   :  { %v662_v35 = vmul.f32 %v1320_v33, %v660_v34  ;;  %v986_v34 = vld [vmem:[#allocation10] sm:$0xff] }
 0xc4d   :  { %664 = vrot.lane.b32.xlu1 %v662_v35, %s1468_s3 }
 0xcbf   :  { %v665_v37 = vpop.permute.xlu1 %664 }
 0xcc0   :  { %v667_v38 = vadd.f32 %v665_v37, %v657_v36 }
 0xcc2   :  { %1321 = vtanh.f32 %v667_v38 }
 0xccf   :  { %v1322_v39 = vpop.eup %1321 }
 0xcd0   :  { %670 = vrot.lane.b32.xlu0 %v1322_v39, %s1467_s17  ;;  %v1116_v39 = vld [vmem:[%s1687_s5] ss:$0 sm:$0xff]  ;;  %s1431_s5 = scalar_lea.vmem %s1089_s21, 128 }
 0xcd1   :  { %p1432_p6 = scmp.ne.s32.totalorder %s1089_s21, %s1431_s5  ;;  %p1437_p8 = scmp.lt.s32.totalorder %s1431_s5, %s1431_s5 }
 0xcd3   :  { %p1438_p9 = por %p1437_p8, %p1436_p7 }
 0xcd5   :  { %p1439_p10 = pnand %p1438_p9, %p1432_p6 }
 0xd42   :  { %v671_v40 = vpop.permute.xlu0 %670 }
 0xd43   :  { %v673_v41 = vmul.f32 %v1320_v33, %v671_v40  ;;  %v987_v33 = vld [vmem:[#allocation10 + $0x8] sm:$0xff] }
 0xd45   :  { %675 = vrot.lane.b32.xlu1 %v673_v41, %s1468_s3 }
 0xdb7   :  { %v676_v42 = vpop.permute.xlu1 %675 }
 0xdb8   :  { %678 = vst.msk [vmem:[#allocation3 + $0x4] sm:$0x1] %vm269_vm2, %v676_v42  ;;  %1237 = vmatmul.mubr.msk.f32.vlgmr.msra.gmra.mxu0 %vm167_vm3, %v676_v42 }
 0xdb9   :  { %1251 = vmatpush3.msra.mxu0 %v1532_v4  ;;  %1258 = vmatprep.mubr.msk.f32.mxu0 %vm1466_vm0, %v1465_v0 }
 0xdba   :  { %1252 = vmatprep.subr.mxu0 %v1465_v0 }
 0xdbb   :  { %1253 = vmatpush3.msra.mxu0 %v1534_v5 }
 0xdbc   :  { %1254 = vmatprep.subr.mxu0 %v1465_v0 }
 0xdbd   :  { %1255 = vmatpush3.msra.mxu0 %v1539_v6 }
 0xdbe   :  { %1256 = vmatprep.subr.mxu0 %v1465_v0 }
 0xdbf   :  { %1257 = vmatpush3.msra.mxu0 %v1543_v7 }
 0xe78   :  { %v748_v44 = vpop.f32.mrf.mxu0 }
 0xe79   :  { %v749_v45 = vadd.f32 %v748_v44, %v679_v43 }
 0xe7a   :  { %v1238_v46 = vpop.f32.mrf.mxu0 }
 0xe7b   :  { %1323 = vtanh.f32 %v749_v45  ;;  %v1111_v47 = vmul.f32 -1.442695, %v749_v45 }
 0xe7d   :  { %1325 = vpow2.f32 %v1111_v47 }
 0xe88   :  { %v1324_v4 = vpop.eup %1323 }
 0xe89   :  { %761 = vrot.lane.b32.xlu0 %v1324_v4, %s1467_s17 }
 0xe8a   :  { %v1326_v48 = vpop.eup %1325 }
 0xe8b   :  { %v755_v5 = vadd.f32 1.0, %v1326_v48 }
 0xe8d   :  { %1327 = vrcp.f32 %v755_v5 }
 0xe9a   :  { %v1328_v49 = vpop.eup %1327 }
 0xe9b   :  { %v759_v51 = vmul.f32 %v1328_v49, %v667_v38 }
 0xefb   :  { %v762_v50 = vpop.permute.xlu0 %761 }
 0xefc   :  { %v764_v6 = vmul.f32 %v1328_v49, %v762_v50 }
 0xefe   :  { %766 = vrot.lane.b32.xlu1 %v764_v6, %s1468_s3 }
 0xf70   :  { %v767_v7 = vpop.permute.xlu1 %766 }
 0xf71   :  { %v769_v52 = vadd.f32 %v767_v7, %v759_v51 }
 0xf73   :  { %1329 = vtanh.f32 %v769_v52 }
 0xf80   :  { %v1330_v53 = vpop.eup %1329 }
 0xf81   :  { %772 = vrot.lane.b32.xlu0 %v1330_v53, %s1467_s17 }
 0xff3   :  { %v773_v54 = vpop.permute.xlu0 %772 }
 0xff4   :  { %v775_v55 = vmul.f32 %v1328_v49, %v773_v54 }
 0xff6   :  { %777 = vrot.lane.b32.xlu1 %v775_v55, %s1468_s3 }
0x1068   :  { %v778_v56 = vpop.permute.xlu1 %777 }
0x1069   :  { %780 = vst.msk [vmem:[#allocation3 + $0x5] sm:$0x1] %vm269_vm2, %v778_v56  ;;  %1248 = vmatmul.mubr.msk.f32.vlgmr.msra.gmra.mxu1 %vm167_vm3, %v778_v56 }
0x106a   :  { %1269 = vmatprep.mubr.msk.f32.mxu1 %vm1466_vm0, %v1465_v0  ;;  %1262 = vmatpush3.msra.mxu1 %v989_v31 }
0x106b   :  { %1263 = vmatprep.subr.mxu1 %v1465_v0 }
0x106c   :  { %1264 = vmatpush3.msra.mxu1 %v988_v32 }
0x106d   :  { %1265 = vmatprep.subr.mxu1 %v1465_v0 }
0x106e   :  { %1266 = vmatpush3.msra.mxu1 %v987_v33 }
0x106f   :  { %1267 = vmatprep.subr.mxu1 %v1465_v0 }
0x1070   :  { %1268 = vmatpush3.msra.mxu1 %v986_v34 }
0x1129   :  { %v850_v58 = vpop.f32.mrf.mxu1 }
0x112a   :  { %v851_v59 = vadd.f32 %v850_v58, %v781_v57 }
0x112b   :  { %v1249_v60 = vpop.f32.mrf.mxu1 }
0x112c   :  { %1331 = vtanh.f32 %v851_v59  ;;  %v1113_v62 = vmul.f32 -1.442695, %v851_v59 }
0x112e   :  { %1333 = vpow2.f32 %v1113_v62 }
0x1139   :  { %v1332_v61 = vpop.eup %1331 }
0x113a   :  { %863 = vrot.lane.b32.xlu0 %v1332_v61, %s1467_s17 }
0x113b   :  { %v1334_v63 = vpop.eup %1333 }
0x113c   :  { %v857_v1 = vadd.f32 1.0, %v1334_v63 }
0x113e   :  { %1335 = vrcp.f32 %v857_v1 }
0x114b   :  { %v1336_v2 = vpop.eup %1335 }
0x114c   :  { %v861_v9 = vmul.f32 %v1336_v2, %v769_v52 }
0x11ac   :  { %v864_v3 = vpop.permute.xlu0 %863 }
0x11ad   :  { %v866_v8 = vmul.f32 %v1336_v2, %v864_v3 }
0x11af   :  { %868 = vrot.lane.b32.xlu1 %v866_v8, %s1468_s3 }
0x1221   :  { %v869_v10 = vpop.permute.xlu1 %868 }
0x1222   :  { %v871_v11 = vadd.f32 %v869_v10, %v861_v9 }
0x1224   :  { %1337 = vtanh.f32 %v871_v11 }
0x1231   :  { %v1338_v12 = vpop.eup %1337 }
0x1232   :  { %874 = vrot.lane.b32.xlu0 %v1338_v12, %s1467_s17 }
0x12a4   :  { %v875_v13 = vpop.permute.xlu0 %874 }
0x12a5   :  { %v877_v14 = vmul.f32 %v1336_v2, %v875_v13 }
0x12a7   :  { %879 = vrot.lane.b32.xlu1 %v877_v14, %s1468_s3 }
0x1319   :  { %v880_v15 = vpop.permute.xlu1 %879 }
0x131a   :  { %882 = vst.msk [vmem:[#allocation3 + $0x6] sm:$0x1] %vm269_vm2, %v880_v15  ;;  %1259 = vmatmul.mubr.msk.f32.vlgmr.msra.gmra.mxu0 %vm167_vm3, %v880_v15 }
0x13da   :  { %v952_v17 = vpop.f32.mrf.mxu0 }
0x13db   :  { %v953_v18 = vadd.f32 %v952_v17, %v883_v16 }
0x13dc   :  { %v1260_v19 = vpop.f32.mrf.mxu0 }
0x13dd   :  { %1339 = vtanh.f32 %v953_v18  ;;  %v1115_v21 = vmul.f32 -1.442695, %v953_v18 }
0x13df   :  { %1341 = vpow2.f32 %v1115_v21 }
0x13ea   :  { %v1340_v20 = vpop.eup %1339 }
0x13eb   :  { %965 = vrot.lane.b32.xlu0 %v1340_v20, %s1467_s17 }
0x13ec   :  { %v1342_v22 = vpop.eup %1341 }
0x13ed   :  { %v959_v23 = vadd.f32 1.0, %v1342_v22 }
0x13ef   :  { %1343 = vrcp.f32 %v959_v23 }
0x13fc   :  { %v1344_v24 = vpop.eup %1343 }
0x13fd   :  { %v963_v27 = vmul.f32 %v1344_v24, %v871_v11 }
0x145d   :  { %v966_v25 = vpop.permute.xlu0 %965 }
0x145e   :  { %v968_v26 = vmul.f32 %v1344_v24, %v966_v25 }
0x1460   :  { %970 = vrot.lane.b32.xlu1 %v968_v26, %s1468_s3 }
0x14d2   :  { %v971_v28 = vpop.permute.xlu1 %970 }
0x14d3   :  { %v973_v29 = vadd.f32 %v971_v28, %v963_v27 }
0x14d5   :  { %1345 = vtanh.f32 %v973_v29 }
0x14e2   :  { %v1346_v30 = vpop.eup %1345 }
0x14e3   :  { %976 = vrot.lane.b32.xlu0 %v1346_v30, %s1467_s17 }
0x1555   :  { %v977_v35 = vpop.permute.xlu0 %976 }
0x1556   :  { %v979_v36 = vmul.f32 %v1344_v24, %v977_v35 }
0x1558   :  { %981 = vrot.lane.b32.xlu1 %v979_v36, %s1468_s3 }
0x15ca   :  { %v982_v37 = vpop.permute.xlu1 %981 }
0x15cb   :  { %984 = vst.msk [vmem:[#allocation3 + $0x7] sm:$0x1] %vm269_vm2, %v982_v37 }
0x15d2   :  { %v985_v38 = vld [vmem:[#allocation3] sm:$0xff] }
0x15d3   :  { %1270 = vmatmul.mubr.msk.f32.vlgmr.msra.gmra.mxu1 %vm167_vm3, %v985_v38 }
0x1693   :  { %v1066_v40 = vpop.f32.mrf.mxu1 }
0x1694   :  { %v1067_v41 = vadd.f32 %v1116_v39, %v1066_v40 }
0x1695   :  { %v1271_v42 = vpop.f32.mrf.mxu1 }
0x1696   :  { %1070 = vmax.xlane.f32.xlu0 %v1067_v41 }
0x171f   :  { %v1071_v0 = vpop.xlane.xlu0 %1070 }
0x1720   :  { %v1072_v43 = vsub.f32 %v1067_v41, %v1071_v0 }
0x1722   :  { %v1073_v44 = vmul.f32 1.442695, %v1072_v43 }
0x1724   :  { %1347 = vpow2.f32 %v1073_v44 }
0x1731   :  { %v1348_v45 = vpop.eup %1347 }
0x1732   :  { %1075 = vadd.xlane.f32.xlu1 %v1348_v45 }
0x17bb   :  { %v1076_v46 = vpop.xlane.xlu1 %1075 }
0x17bc   :  { %1349 = vlog2.f32 %v1076_v46 }
0x17c9   :  { %v1350_v4 = vpop.eup %1349 }
0x17ca   :  { %v1078_v47 = vmul.f32 0.6931472, %v1350_v4 }
0x17cc   :  { %v1079_v48 = vadd.f32 %v1078_v47, %v1071_v0 }
0x17ce   :  { %v1080_v5 = vsub.f32 %v1067_v41, %v1079_v48 }
0x17d0   :  { %1081 = vst [vmem:[#allocation12] sm:$0xff] %v1080_v5 }
0x17d1   :  { %1442 = shalt.err (!%p1439_p10)
}
0x17d2   :  { %1091 = dma.vmem_to_hbm [thread:$0]  %s1089_s21, 128, %s1688_s6, [#allocation6]  }
0x17d3   :  { %1457 = dma.done.wait [#allocation6], 128  }
0x17d4   :  { %1458 = vsyncadd [#allocation6], 4294967168 }
0x17d5   :  { %1095 = vsyncpa [#allocation5], 1 }
0x17d6   :  { %1096 = vsyncpa [#allocation8], 1 }
0x17d7   :  { %1097 = vsyncpa [#allocation11], 1 }
0x17d8   :  { %1098 = vsyncpa [#allocation6], 1 }

</bundles_post_ra>
